<compile_context>
chip_gen: v5e
topology: v5e:2x2
jax: 0.10.0
libtpu: 0.0.40
codegen_flags: <defaults>
</compile_context>

<pallas_src>
import jax
import jax.numpy as jnp
from jax.experimental import pallas as pl
from jax.experimental.pallas import tpu as pltpu

_LN2 = 0.6931471805599453


def _sinh_kernel(x_ref, o_ref):
    x = x_ref[...].astype(jnp.float32)

    # Large-|x| branch: fold the 0.5 into the exponent (avoids the spurious
    # overflow window near |x| ~ 88.7..89.4 of 0.5*(exp(x)-exp(-x))).
    big = jnp.exp(x - _LN2) - jnp.exp(-x - _LN2)

    # Small-|x| branch: odd Taylor polynomial (accurate to f32 eps for
    # |x| < 0.5), avoids cancellation near zero.
    x2 = x * x
    poly = x * (1.0 + x2 * (1.0 / 6.0 + x2 * (1.0 / 120.0 + x2 * (1.0 / 5040.0))))

    y = jnp.where(jnp.abs(x) < 0.5, poly, big)
    o_ref[...] = y.astype(o_ref.dtype)


def sinh_pallas(x, *, block_bytes=2 * 1024 * 1024, max_lanes=2048):
    orig_shape = x.shape
    orig_dtype = x.dtype
    n = x.size
    if n == 0:
        return x

    xf = jnp.ravel(x)

    # Pick the widest lane-dense last dim (multiple of 128) that divides n so
    # the reshape is metadata-only and stores are unmasked.  Otherwise pad to
    # 128-lane granularity only (<=127 extra elements).
    lanes = 0
    cand = max_lanes
    while cand >= 128:
        if n % cand == 0:
            lanes = cand
            break
        cand //= 2

    padded = lanes == 0
    if padded:
        lanes = 128
        n_pad = pl.cdiv(n, lanes) * lanes
        xf = jnp.pad(xf, (0, n_pad - n))
    else:
        n_pad = n

    rows = n_pad // lanes
    x2d = xf.reshape(rows, lanes)

    itemsize = jnp.dtype(orig_dtype).itemsize
    # ~block_bytes per buffer, rounded down to sublane (8) granularity.
    bt = block_bytes // (lanes * itemsize)
    bt = max(8, (bt // 8) * 8)
    if rows <= bt:
        bt = rows  # full-extent block (valid even if rows % 8 != 0)
    grid = (pl.cdiv(rows, bt),)

    cost = pl.CostEstimate(
        flops=10 * n,
        transcendentals=2 * n,
        bytes_accessed=2 * n * itemsize,
    )

    out2d = pl.pallas_call(
        _sinh_kernel,
        out_shape=jax.ShapeDtypeStruct(x2d.shape, orig_dtype),
        grid_spec=pltpu.PrefetchScalarGridSpec(
            num_scalar_prefetch=0,
            grid=grid,
            in_specs=[pl.BlockSpec((bt, lanes), lambda i: (i, 0))],
            out_specs=pl.BlockSpec((bt, lanes), lambda i: (i, 0)),
        ),
        compiler_params=pltpu.CompilerParams(
            dimension_semantics=("parallel",),
        ),
        cost_estimate=cost,
    )(x2d)

    out = out2d.reshape(-1)
    if padded:
        out = out[:n]
    return out.reshape(orig_shape)


if __name__ == "__main__":
    key = jax.random.PRNGKey(0)

    # Shape implied by the module's elementwise forward (batch=2, ch=4, 16x16).
    x = jax.random.normal(key, (2, 4, 16, 16), dtype=jnp.float32)
    y = sinh_pallas(x)
    jax.block_until_ready(y)
    y_ref = jnp.sinh(x)
    assert jnp.allclose(y, y_ref, atol=1e-5, rtol=1e-5), "mismatch vs jnp.sinh"
    assert y.shape == x.shape and y.dtype == x.dtype

    # Ragged-size path (total not a multiple of 128) — exercises minimal padding.
    x_rag = jax.random.normal(jax.random.PRNGKey(1), (3, 7, 5), dtype=jnp.float32)
    y_rag = sinh_pallas(x_rag)
    jax.block_until_ready(y_rag)
    assert jnp.allclose(y_rag, jnp.sinh(x_rag), atol=1e-5, rtol=1e-5)
    assert y_rag.shape == x_rag.shape

    # Extreme-value check: sinh(89) is finite in f32 (~2.24e38); the naive
    # 0.5*(exp(x)-exp(-x)) form would return inf here.
    x_big = jnp.array([89.0, -89.0, 0.0, 1e-6], dtype=jnp.float32)
    y_big = sinh_pallas(x_big)
    jax.block_until_ready(y_big)
    assert bool(jnp.all(jnp.isfinite(y_big)))
    assert float(y_big[0]) > 1e38 and float(y_big[1]) < -1e38
    assert jnp.allclose(y_big[2:], jnp.sinh(x_big[2:]), atol=1e-12, rtol=1e-6)

    # bf16 path (upcast compute, downcast store).
    x_bf = jax.random.normal(jax.random.PRNGKey(2), (2, 4, 16, 16)).astype(jnp.bfloat16)
    y_bf = sinh_pallas(x_bf)
    jax.block_until_ready(y_bf)
    assert y_bf.dtype == jnp.bfloat16
    assert jnp.allclose(y_bf.astype(jnp.float32),
                        jnp.sinh(x_bf.astype(jnp.float32)), atol=3e-2, rtol=3e-2)

    print("KERNEL_OK")
</pallas_src>

<mosaic_0001>
module attributes {stable_mosaic.version = 11 : i64} {
  func.func @_sinh_kernel(%arg0: i32, %arg1: memref<1x2048xf32, #tpu.memory_space<vmem>>, %arg2: memref<1x2048xf32, #tpu.memory_space<vmem>>) attributes {dimension_semantics = [#tpu.dimension_semantics<parallel>], iteration_bounds = array<i64: 1>, scalar_prefetch = 0 : i64, scratch_operands = 0 : i64, tpu.core_type = #tpu.core_type<tc>, window_params = [{transform_indices = @transform_0, window_bounds = array<i64: 1, 2048>}, {transform_indices = @transform_1, window_bounds = array<i64: 1, 2048>}]} {
    %c0 = arith.constant 0 : index
    %c0_0 = arith.constant 0 : index
    %0 = vector.load %arg1[%c0, %c0_0] : memref<1x2048xf32, #tpu.memory_space<vmem>>, vector<1x2048xf32>
    %cst = arith.constant 0.693147182 : f32
    %1 = vector.broadcast %cst : f32 to vector<1x2048xf32>
    %2 = arith.subf %0, %1 : vector<1x2048xf32>
    %3 = math.exp %2 : vector<1x2048xf32>
    %cst_1 = arith.constant 0.000000e+00 : f32
    %4 = vector.broadcast %cst_1 : f32 to vector<1x2048xf32>
    %5 = arith.subf %4, %0 : vector<1x2048xf32>
    %cst_2 = arith.constant 0.693147182 : f32
    %6 = vector.broadcast %cst_2 : f32 to vector<1x2048xf32>
    %7 = arith.subf %5, %6 : vector<1x2048xf32>
    %8 = math.exp %7 : vector<1x2048xf32>
    %9 = arith.subf %3, %8 : vector<1x2048xf32>
    %10 = arith.mulf %0, %0 : vector<1x2048xf32>
    %cst_3 = arith.constant 1.98412701E-4 : f32
    %11 = vector.broadcast %cst_3 : f32 to vector<1x2048xf32>
    %12 = arith.mulf %10, %11 : vector<1x2048xf32>
    %cst_4 = arith.constant 0.00833333377 : f32
    %13 = vector.broadcast %cst_4 : f32 to vector<1x2048xf32>
    %14 = arith.addf %13, %12 : vector<1x2048xf32>
    %15 = arith.mulf %10, %14 : vector<1x2048xf32>
    %cst_5 = arith.constant 0.166666672 : f32
    %16 = vector.broadcast %cst_5 : f32 to vector<1x2048xf32>
    %17 = arith.addf %16, %15 : vector<1x2048xf32>
    %18 = arith.mulf %10, %17 : vector<1x2048xf32>
    %cst_6 = arith.constant 1.000000e+00 : f32
    %19 = vector.broadcast %cst_6 : f32 to vector<1x2048xf32>
    %20 = arith.addf %19, %18 : vector<1x2048xf32>
    %21 = arith.mulf %0, %20 : vector<1x2048xf32>
    %22 = math.absf %0 : vector<1x2048xf32>
    %cst_7 = arith.constant 5.000000e-01 : f32
    %23 = vector.broadcast %cst_7 : f32 to vector<1x2048xf32>
    %24 = arith.cmpf olt, %22, %23 : vector<1x2048xf32>
    %25 = arith.select %24, %21, %9 : vector<1x2048xi1>, vector<1x2048xf32>
    %c0_8 = arith.constant 0 : index
    %c0_9 = arith.constant 0 : index
    %26 = vector.load %arg2[%c0_8, %c0_9] : memref<1x2048xf32, #tpu.memory_space<vmem>>, vector<1x2048xf32>
    tpu.vector_store %arg2[%c0_8, %c0_9], %25 {strides = array<i32>} : memref<1x2048xf32, #tpu.memory_space<vmem>>, vector<1x2048xf32>,
    return
  }
  func.func @transform_0(%arg0: i32) -> (i32, i32) {
    %c0_i32 = arith.constant 0 : i32
    %c0_i32_0 = arith.constant 0 : i32
    return %arg0, %c0_i32 : i32, i32
  }
  func.func @transform_1(%arg0: i32) -> (i32, i32) {
    %c0_i32 = arith.constant 0 : i32
    %c0_i32_0 = arith.constant 0 : i32
    return %arg0, %c0_i32 : i32, i32
  }
}

</mosaic_0001>

<bundles_post_ra>
// kernel: tpu_custom_call.1
= control target key start
LH: loop header
LB: loop body
LE: loop exit
PB: predicated region body
PF: predicated region fallthrough
CT: control target
= control target key end

     0   :  { %6 = vsyncpa [#allocation3], 0  ;;  %s166_s0 = inlined_call_operand.hbm [shape: f32[1,2048], index: 0, kind: input, shape index: {}]   ;;  %s167_s1 = inlined_call_operand.hbm [shape: f32[1,2048], index: 1, kind: output, shape index: {}]  }
   0x1   :  { %7 = vsyncpa [#allocation4], 0  ;;  %s13_s8 = sshll.u32 %s166_s0, 4  ;;  %s148_s9 = smov [#allocation2]   ;;  %s14_s8 = int_to_ptr.hbm [resolvable:$true] %s13_s8 }
   0x2   :  { %s15_s10 = sshll.u32 %s148_s9, 4  ;;  %s16_s10 = int_to_ptr.vmem [resolvable:$true] %s15_s10 }
   0x3   :  { %18 = dma.hbm_to_vmem [thread:$0]  %s14_s8, 256, %s16_s10, [#allocation3]  }
   0x4   :  { %144 = dma.done.wait [#allocation3], 256  }
   0x5   :  { %145 = vsyncadd [#allocation3], 4294967040  ;;  %v23_v0 = vld [vmem:[#allocation2] sm:$0xff]  ;;  %v24_v1 = vld [vmem:[#allocation2 + $0x8] sm:$0xff]  ;;  %s149_s0 = smov [#allocation5]   ;;  %s72_s14 = sshll.u32 %s167_s1, 4  ;;  %s73_s14 = int_to_ptr.hbm [resolvable:$true] %s72_s14 }
   0x6   :  { %v82_v2 = vadd.f32 -0.6931472, %v23_v0  ;;  %v31_v3 = vsub.f32 0.0, %v23_v0  ;;  %v41_v4 = vmul.f32 %v23_v0, %v23_v0  ;;  %v83_v5 = vadd.f32 -0.6931472, %v24_v1  ;;  %s70_s11 = sshll.u32 %s149_s0, 4  ;;  %s71_s11 = int_to_ptr.vmem [resolvable:$true] %s70_s11 }
   0x7   :  { %v32_v6 = vsub.f32 0.0, %v24_v1  ;;  %v42_v7 = vmul.f32 %v24_v1, %v24_v1  ;;  %v57_v21 = vand.u32 2147483647, %v23_v0  ;;  %v58_v26 = vand.u32 2147483647, %v24_v1 }
   0x8   :  { %v27_v8 = vmul.f32 1.442695, %v82_v2  ;;  %v84_v9 = vadd.f32 -0.6931472, %v31_v3  ;;  %v43_v10 = vmul.f32 0.0001984127, %v41_v4 }
   0x9   :  { %v29_v11 = vmul.f32 1.442695, %v83_v5  ;;  %v85_v12 = vadd.f32 -0.6931472, %v32_v6  ;;  %v44_v15 = vmul.f32 0.0001984127, %v42_v7 }
   0xa   :  { %88 = vpow2.f32 %v27_v8  ;;  %v35_v13 = vmul.f32 1.442695, %v84_v9  ;;  %v45_v14 = vadd.f32 0.008333334, %v43_v10  ;;  %vm59_vm0 = vcmp.lt.f32.partialorder %v57_v21, 0.5 }
   0xb   :  { %90 = vpow2.f32 %v29_v11  ;;  %v37_v16 = vmul.f32 1.442695, %v85_v12  ;;  %v46_v18 = vadd.f32 0.008333334, %v44_v15  ;;  %vm60_vm1 = vcmp.lt.f32.partialorder %v58_v26, 0.5 }
   0xc   :  { %92 = vpow2.f32 %v35_v13  ;;  %v47_v17 = vmul.f32 %v45_v14, %v41_v4 }
   0xd   :  { %94 = vpow2.f32 %v37_v16  ;;  %v48_v20 = vmul.f32 %v46_v18, %v42_v7 }
   0xe   :  { %v49_v19 = vadd.f32 0.16666667, %v47_v17 }
   0xf   :  { %v50_v24 = vadd.f32 0.16666667, %v48_v20 }
  0x10   :  { %v89_v22 = vpop.eup %88  ;;  %v51_v23 = vmul.f32 %v49_v19, %v41_v4 }
  0x11   :  { %v91_v25 = vpop.eup %90  ;;  %v52_v29 = vmul.f32 %v50_v24, %v42_v7 }
  0x12   :  { %v93_v27 = vpop.eup %92  ;;  %v53_v28 = vadd.f32 1.0, %v51_v23 }
  0x13   :  { %v95_v30 = vpop.eup %94  ;;  %v39_v31 = vsub.f32 %v89_v22, %v93_v27  ;;  %v54_v34 = vadd.f32 1.0, %v52_v29 }
  0x14   :  { %v55_v32 = vmul.f32 %v53_v28, %v23_v0  ;;  %v40_v33 = vsub.f32 %v91_v25, %v95_v30 }
  0x15   :  { %v56_v36 = vmul.f32 %v54_v34, %v24_v1 }
  0x16   :  { %v61_v35 = vsel %vm59_vm0, %v55_v32, %v39_v31 }
  0x17   :  { %63 = vst [vmem:[#allocation5] sm:$0xff] %v61_v35  ;;  %v62_v37 = vsel %vm60_vm1, %v56_v36, %v40_v33 }
  0x18   :  { %64 = vst [vmem:[#allocation5 + $0x8] sm:$0xff] %v62_v37 }
  0x19   :  { %75 = dma.vmem_to_hbm [thread:$0]  %s71_s11, 256, %s73_s14, [#allocation4]  }
  0x1a   :  { %146 = dma.done.wait [#allocation4], 256  }
  0x1b   :  { %147 = vsyncadd [#allocation4], 4294967040 }
  0x1c   :  { %80 = vsyncpa [#allocation3], 1 }
  0x1d   :  { %81 = vsyncpa [#allocation4], 1 }

</bundles_post_ra>
